<compile_context>
chip_gen: v5e
topology: v5e:2x2
jax: 0.10.0
libtpu: 0.0.40
codegen_flags: <defaults>
</compile_context>

<pallas_src>
import jax
import jax.numpy as jnp
from jax.experimental import pallas as pl
from jax.experimental.pallas import tpu as pltpu

SEQ_LEN = 10            # fixed by the PyTorch module
K = 3                   # conv kernel size
C_OUT = 64              # conv out channels
L_CONV = SEQ_LEN - K + 1        # 8
L_POOL = L_CONV // 2            # 4
FC1_IN = C_OUT * L_POOL         # 256
FC1_OUT = 50
FC2_OUT = 1

X_AUG = 16                      # 10 data cols + 1 ones col (bias) + 5 zero pad
CONV_W = 2 * L_POOL * C_OUT     # 512 fused-conv output columns
LANE_PAD = 128                  # fc1 / fc2 outputs padded to a full lane width


def cnn_kernel(x_ref, wconv_ref, w1_ref, b1_ref, w2_ref, out_ref):
    # Fused im2col + conv1 + bias: (TB, 16) @ (16, 512)  (bias via ones column)
    conv = jnp.dot(x_ref[...], wconv_ref[...],
                   preferred_element_type=jnp.float32)
    conv = jnp.maximum(conv, 0.0)                           # ReLU

    # MaxPool1d(2): even conv positions in lanes [:256], odd in lanes [256:].
    half = conv.shape[1] // 2                               # 256, tile aligned
    pooled = jnp.maximum(conv[:, :half], conv[:, half:])    # (TB, 256)

    # fc1 as a single K=256 matmul + bias + ReLU (output lane-padded to 128).
    # Padded column 50 carries a constant 1.0 (zero weights, bias 1) so the
    # fc2 bias can ride inside the fc2 matmul below.
    h1 = jnp.dot(pooled, w1_ref[...], preferred_element_type=jnp.float32)
    h1 = jnp.maximum(h1 + b1_ref[...], 0.0)                 # (TB, 128)

    # fc2 (+ bias folded into row 50), lane-padded to 128 columns.
    out_ref[...] = jnp.dot(h1, w2_ref[...],
                           preferred_element_type=jnp.float32)


def _round_up(n, m):
    return ((n + m - 1) // m) * m


def cnn_forward(x, params):
    """x: (B, 1, SEQ_LEN) float32, params: dict of PyTorch-shaped weights."""
    wc, bc, w1, b1, w2, b2 = (params["wc"], params["bc"], params["w1"],
                              params["b1"], params["w2"], params["b2"])
    B = x.shape[0]

    # ---- batch tiling -------------------------------------------------------
    B8 = max(8, _round_up(B, 8))
    TB = min(1024, B8)                      # batch tile (multiple of 8)
    B_pad = _round_up(B8, TB)
    grid = (B_pad // TB,)

    # ---- activations: (B_pad, 16) = [x | 1 | zero pad] ----------------------
    xs = x[:, 0, :]                                              # (B, 10)
    xs_aug = jnp.concatenate(
        [xs, jnp.ones((B, 1), xs.dtype),
         jnp.zeros((B, X_AUG - SEQ_LEN - 1), xs.dtype)], axis=1)  # (B, 16)
    if B_pad > B:
        xs_aug = jnp.pad(xs_aug, ((0, B_pad - B), (0, 0)))

    # ---- fused banded conv weight (16, 512), columns ordered (s, p, c) ------
    wc2 = wc[:, 0, :]                                            # (64, 3)
    blocks = []
    for s in range(2):
        for p in range(L_POOL):
            l = 2 * p + s
            blk = jnp.zeros((X_AUG, C_OUT), jnp.float32)
            blk = blk.at[l:l + K, :].set(wc2.T)                  # conv taps
            blk = blk.at[SEQ_LEN, :].set(bc)                     # bias row
            blocks.append(blk)
    wconv = jnp.concatenate(blocks, axis=1)                      # (16, 512)

    # ---- fc1 weights: permute cols to (p, c) order, pad 50 -> 128 -----------
    # PyTorch flatten index = c*L_POOL + p ; kernel uses index = p*C_OUT + c
    w1_perm = (w1.reshape(FC1_OUT, C_OUT, L_POOL)
                 .transpose(0, 2, 1)
                 .reshape(FC1_OUT, FC1_IN))                      # [o, p*64+c]
    w1_k = jnp.pad(w1_perm.T, ((0, 0), (0, LANE_PAD - FC1_OUT)))  # (256, 128)
    # Padded bias column FC1_OUT (=50) is forced to 1.0 -> constant 1 after
    # ReLU, used as the fc2-bias carrier.
    b1_k = (jnp.pad(b1, (0, LANE_PAD - FC1_OUT))
               .at[FC1_OUT].set(1.0)
               .reshape(1, LANE_PAD))

    # ---- fc2 weights: lane-padded (128, 128); column 0 live, bias in row 50 -
    w2_k = (jnp.zeros((LANE_PAD, LANE_PAD), jnp.float32)
               .at[:FC1_OUT, 0].set(w2[0])
               .at[FC1_OUT, 0].set(b2[0]))

    out_full = pl.pallas_call(
        cnn_kernel,
        out_shape=jax.ShapeDtypeStruct((B_pad, LANE_PAD), jnp.float32),
        grid=grid,
        in_specs=[
            pl.BlockSpec((TB, X_AUG), lambda i: (i, 0)),          # activations
            pl.BlockSpec((X_AUG, CONV_W), lambda i: (0, 0)),      # fused conv W
            pl.BlockSpec((FC1_IN, LANE_PAD), lambda i: (0, 0)),   # fc1 W
            pl.BlockSpec((1, LANE_PAD), lambda i: (0, 0)),        # fc1 b
            pl.BlockSpec((LANE_PAD, LANE_PAD), lambda i: (0, 0)), # fc2 W (+b)
        ],
        out_specs=pl.BlockSpec((TB, LANE_PAD), lambda i: (i, 0)),
        compiler_params=pltpu.CompilerParams(
            dimension_semantics=("parallel",)),
    )(xs_aug, wconv, w1_k, b1_k, w2_k)

    return out_full[:B, :FC2_OUT]                                # (B, 1)


def cnn_reference(x, params):
    """Pure-JAX forward matching PyTorch semantics exactly (for validation)."""
    wc, bc, w1, b1, w2, b2 = (params["wc"], params["bc"], params["w1"],
                              params["b1"], params["w2"], params["b2"])
    B = x.shape[0]
    xs = x[:, 0, :]
    conv = jnp.stack([xs[:, l:l + K] @ wc[:, 0, :].T for l in range(L_CONV)],
                     axis=2) + bc[None, :, None]                 # (B, 64, 8)
    conv = jnp.maximum(conv, 0.0)
    pooled = jnp.max(conv.reshape(B, C_OUT, L_POOL, 2), axis=3)  # (B, 64, 4)
    flat = pooled.reshape(B, FC1_IN)                             # channel-major
    h1 = jnp.maximum(flat @ w1.T + b1, 0.0)
    return h1 @ w2.T + b2


def make_params(key):
    ks = jax.random.split(key, 6)
    return {
        "wc": jax.random.normal(ks[0], (C_OUT, 1, K), jnp.float32) * 0.2,
        "bc": jax.random.normal(ks[1], (C_OUT,), jnp.float32) * 0.1,
        "w1": jax.random.normal(ks[2], (FC1_OUT, FC1_IN), jnp.float32) * 0.05,
        "b1": jax.random.normal(ks[3], (FC1_OUT,), jnp.float32) * 0.1,
        "w2": jax.random.normal(ks[4], (FC2_OUT, FC1_OUT), jnp.float32) * 0.1,
        "b2": jax.random.normal(ks[5], (FC2_OUT,), jnp.float32) * 0.1,
    }


if __name__ == "__main__":
    key = jax.random.PRNGKey(0)
    pkey, xkey = jax.random.split(key)
    params = make_params(pkey)

    B = 4
    x = jax.random.normal(xkey, (B, 1, SEQ_LEN), jnp.float32)

    fwd = jax.jit(cnn_forward)          # weight prep constant-folds under jit
    out = jax.block_until_ready(fwd(x, params))
    ref = jax.block_until_ready(cnn_reference(x, params))

    assert out.shape == (B, FC2_OUT), out.shape
    assert jnp.allclose(out, ref, atol=1e-4, rtol=1e-4), (out, ref)
    print("KERNEL_OK")
</pallas_src>

<mosaic_0001>
module attributes {stable_mosaic.version = 11 : i64} {
  func.func @cnn_kernel(%arg0: i32, %arg1: memref<8x16xf32, #tpu.memory_space<vmem>>, %arg2: memref<16x512xf32, #tpu.memory_space<vmem>>, %arg3: memref<256x128xf32, #tpu.memory_space<vmem>>, %arg4: memref<1x128xf32, #tpu.memory_space<vmem>>, %arg5: memref<128x128xf32, #tpu.memory_space<vmem>>, %arg6: memref<8x128xf32, #tpu.memory_space<vmem>>) attributes {dimension_semantics = [#tpu.dimension_semantics<parallel>], iteration_bounds = array<i64: 1>, scalar_prefetch = 0 : i64, scratch_operands = 0 : i64, tpu.core_type = #tpu.core_type<tc>, window_params = [{transform_indices = @transform_0, window_bounds = array<i64: 8, 16>}, {pipeline_mode = #tpu.pipeline_mode<synchronous>, transform_indices = @transform_1, window_bounds = array<i64: 16, 512>}, {pipeline_mode = #tpu.pipeline_mode<synchronous>, transform_indices = @transform_2, window_bounds = array<i64: 256, 128>}, {pipeline_mode = #tpu.pipeline_mode<synchronous>, transform_indices = @transform_3, window_bounds = array<i64: 1, 128>}, {pipeline_mode = #tpu.pipeline_mode<synchronous>, transform_indices = @transform_4, window_bounds = array<i64: 128, 128>}, {transform_indices = @transform_5, window_bounds = array<i64: 8, 128>}]} {
    %c0 = arith.constant 0 : index
    %c0_0 = arith.constant 0 : index
    %0 = vector.load %arg1[%c0, %c0_0] : memref<8x16xf32, #tpu.memory_space<vmem>>, vector<8x16xf32>
    %c0_1 = arith.constant 0 : index
    %c0_2 = arith.constant 0 : index
    %1 = vector.load %arg2[%c0_1, %c0_2] : memref<16x512xf32, #tpu.memory_space<vmem>>, vector<16x512xf32>
    %cst = arith.constant dense<0.000000e+00> : vector<8x512xf32>
    %2 = tpu.matmul %0, %1, %cst {dimension_numbers = #tpu.dot_dimension_numbers<[1], [0], [0], [1], [0, 0, 1, 1], [], []>} : vector<8x16xf32>, vector<16x512xf32>, vector<8x512xf32> -> vector<8x512xf32>
    %cst_3 = arith.constant 0.000000e+00 : f32
    %3 = vector.broadcast %cst_3 : f32 to vector<8x512xf32>
    %4 = arith.maximumf %2, %3 : vector<8x512xf32>
    %5 = vector.extract_strided_slice %4 {offsets = [0, 0], sizes = [8, 256], strides = [1, 1]} : vector<8x512xf32> to vector<8x256xf32>
    %6 = vector.extract_strided_slice %4 {offsets = [0, 256], sizes = [8, 256], strides = [1, 1]} : vector<8x512xf32> to vector<8x256xf32>
    %7 = arith.maximumf %5, %6 : vector<8x256xf32>
    %c0_4 = arith.constant 0 : index
    %c0_5 = arith.constant 0 : index
    %8 = vector.load %arg3[%c0_4, %c0_5] : memref<256x128xf32, #tpu.memory_space<vmem>>, vector<256x128xf32>
    %cst_6 = arith.constant dense<0.000000e+00> : vector<8x128xf32>
    %9 = tpu.matmul %7, %8, %cst_6 {dimension_numbers = #tpu.dot_dimension_numbers<[1], [0], [0], [1], [0, 0, 1, 1], [], []>} : vector<8x256xf32>, vector<256x128xf32>, vector<8x128xf32> -> vector<8x128xf32>
    %c0_7 = arith.constant 0 : index
    %c0_8 = arith.constant 0 : index
    %10 = vector.load %arg4[%c0_7, %c0_8] : memref<1x128xf32, #tpu.memory_space<vmem>>, vector<1x128xf32>
    %11 = vector.broadcast %10 : vector<1x128xf32> to vector<8x128xf32>
    %12 = arith.addf %9, %11 : vector<8x128xf32>
    %cst_9 = arith.constant 0.000000e+00 : f32
    %13 = vector.broadcast %cst_9 : f32 to vector<8x128xf32>
    %14 = arith.maximumf %12, %13 : vector<8x128xf32>
    %c0_10 = arith.constant 0 : index
    %c0_11 = arith.constant 0 : index
    %15 = vector.load %arg5[%c0_10, %c0_11] : memref<128x128xf32, #tpu.memory_space<vmem>>, vector<128x128xf32>
    %cst_12 = arith.constant dense<0.000000e+00> : vector<8x128xf32>
    %16 = tpu.matmul %14, %15, %cst_12 {dimension_numbers = #tpu.dot_dimension_numbers<[1], [0], [0], [1], [0, 0, 1, 1], [], []>} : vector<8x128xf32>, vector<128x128xf32>, vector<8x128xf32> -> vector<8x128xf32>
    %c0_13 = arith.constant 0 : index
    %c0_14 = arith.constant 0 : index
    %17 = vector.load %arg6[%c0_13, %c0_14] : memref<8x128xf32, #tpu.memory_space<vmem>>, vector<8x128xf32>
    tpu.vector_store %arg6[%c0_13, %c0_14], %16 {strides = array<i32>} : memref<8x128xf32, #tpu.memory_space<vmem>>, vector<8x128xf32>,
    return
  }
  func.func @transform_0(%arg0: i32) -> (i32, i32) {
    %c0_i32 = arith.constant 0 : i32
    %c0_i32_0 = arith.constant 0 : i32
    return %arg0, %c0_i32 : i32, i32
  }
  func.func @transform_1(%arg0: i32) -> (i32, i32) {
    %c0_i32 = arith.constant 0 : i32
    %c0_i32_0 = arith.constant 0 : i32
    %c0_i32_1 = arith.constant 0 : i32
    return %c0_i32, %c0_i32_0 : i32, i32
  }
  func.func @transform_2(%arg0: i32) -> (i32, i32) {
    %c0_i32 = arith.constant 0 : i32
    %c0_i32_0 = arith.constant 0 : i32
    %c0_i32_1 = arith.constant 0 : i32
    return %c0_i32, %c0_i32_0 : i32, i32
  }
  func.func @transform_3(%arg0: i32) -> (i32, i32) {
    %c0_i32 = arith.constant 0 : i32
    %c0_i32_0 = arith.constant 0 : i32
    %c0_i32_1 = arith.constant 0 : i32
    return %c0_i32, %c0_i32_0 : i32, i32
  }
  func.func @transform_4(%arg0: i32) -> (i32, i32) {
    %c0_i32 = arith.constant 0 : i32
    %c0_i32_0 = arith.constant 0 : i32
    %c0_i32_1 = arith.constant 0 : i32
    return %c0_i32, %c0_i32_0 : i32, i32
  }
  func.func @transform_5(%arg0: i32) -> (i32, i32) {
    %c0_i32 = arith.constant 0 : i32
    %c0_i32_0 = arith.constant 0 : i32
    return %arg0, %c0_i32 : i32, i32
  }
}

</mosaic_0001>

<bundles_post_ra>
// kernel: cnn_forward.1
= control target key start
LH: loop header
LB: loop body
LE: loop exit
PB: predicated region body
PF: predicated region fallthrough
CT: control target
= control target key end

     0   :  { %vm29_vm0 = vcmask 130048   ;;  %s453_s1 = inlined_call_operand.vmem [shape: f32[16,512], index: 1, kind: input, shape index: {}]   ;;  %s454_s0 = inlined_call_operand.vmem [shape: f32[8,16], index: 0, kind: input, shape index: {}]   ;;  %s455_s2 = inlined_call_operand.vmem [shape: f32[256,128], index: 2, kind: input, shape index: {}]   ;;  %s456_s3 = inlined_call_operand.vmem [shape: f32[1,128], index: 3, kind: input, shape index: {}]   ;;  %s457_s4 = inlined_call_operand.vmem [shape: f32[128,128], index: 4, kind: input, shape index: {}]   ;;  %s458_s5 = inlined_call_operand.vmem [shape: f32[8,128], index: 5, kind: output, shape index: {}]  }
   0x1   :  { %v25_v0 = vld [vmem:[%s453_s1 + $0x20] sm:$0xff]  ;;  %v26_v3 = vld [vmem:[%s453_s1 + $0x28] sm:$0xff]  ;;  %v134_v4 = vld [vmem:[%s455_s2 + $0x78] sm:$0xff] }
   0x2   :  { %v21_v1 = vld [vmem:[%s453_s1] sm:$0xff]  ;;  %47 = vmatpush.msra.mxu3 %v25_v0  ;;  %v133_v5 = vld [vmem:[%s455_s2 + $0x70] sm:$0xff]  ;;  %v22_v6 = vld [vmem:[%s453_s1 + $0x8] sm:$0xff]  ;;  %155 = vmatpush.msra.mxu0 %v134_v4 }
   0x3   :  { %v20_v2 = vld [vmem:[%s454_s0] sm:$0xff]  ;;  %v150_v7 = vld [vmem:[%s455_s2 + $0xf8] sm:$0xff]  ;;  %v27_v8 = vld [vmem:[%s453_s1 + $0x30] sm:$0xff] }
   0x4   :  { %48 = vmatpush.msra.mxu3 %v21_v1  ;;  %v132_v9 = vld [vmem:[%s455_s2 + $0x68] sm:$0xff]  ;;  %175 = vmatpush.msra.mxu1 %v150_v7  ;;  %v23_v10 = vld [vmem:[%s453_s1 + $0x10] sm:$0xff]  ;;  %v131_v11 = vld [vmem:[%s455_s2 + $0x60] sm:$0xff] }
   0x5   :  { %237 = vmatmul.msk.f32.vlgmr.msra.gmra.mxu3 %vm29_vm0, %v20_v2  ;;  %156 = vmatpush.msra.mxu0 %v133_v5  ;;  %v130_v12 = vld [vmem:[%s455_s2 + $0x58] sm:$0xff]  ;;  %v129_v15 = vld [vmem:[%s455_s2 + $0x50] sm:$0xff]  ;;  %v128_v17 = vld [vmem:[%s455_s2 + $0x48] sm:$0xff] }
   0x6   :  { %67 = vmatpush.msrb.mxu3 %v26_v3  ;;  %v28_v13 = vld [vmem:[%s453_s1 + $0x38] sm:$0xff]  ;;  %v149_v16 = vld [vmem:[%s455_s2 + $0xf0] sm:$0xff]  ;;  %v148_v18 = vld [vmem:[%s455_s2 + $0xe8] sm:$0xff] }
   0x7   :  { %157 = vmatpush.msra.mxu0 %v132_v9  ;;  %v24_v14 = vld [vmem:[%s453_s1 + $0x18] sm:$0xff]  ;;  %176 = vmatpush.msra.mxu1 %v149_v16  ;;  %v127_v19 = vld [vmem:[%s455_s2 + $0x40] sm:$0xff]  ;;  %v125_v23 = vld [vmem:[%s455_s2 + $0x30] sm:$0xff] }
   0x8   :  { %68 = vmatpush.msrb.mxu3 %v22_v6  ;;  %v147_v20 = vld [vmem:[%s455_s2 + $0xe0] sm:$0xff]  ;;  %v126_v21 = vld [vmem:[%s455_s2 + $0x38] sm:$0xff]  ;;  %v145_v24 = vld [vmem:[%s455_s2 + $0xd0] sm:$0xff] }
   0x9   :  { %158 = vmatpush.msra.mxu0 %v131_v11  ;;  %177 = vmatpush.msra.mxu1 %v148_v18  ;;  %v146_v22 = vld [vmem:[%s455_s2 + $0xd8] sm:$0xff]  ;;  %v124_v25 = vld [vmem:[%s455_s2 + $0x28] sm:$0xff]  ;;  %v123_v27 = vld [vmem:[%s455_s2 + $0x20] sm:$0xff] }
   0xa   :  { %87 = vmatpush.msra.mxu3 %v27_v8  ;;  %v144_v26 = vld [vmem:[%s455_s2 + $0xc8] sm:$0xff]  ;;  %v143_v28 = vld [vmem:[%s455_s2 + $0xc0] sm:$0xff]  ;;  %v122_v29 = vld [vmem:[%s455_s2 + $0x18] sm:$0xff] }
   0xb   :  { %159 = vmatpush.msra.mxu0 %v130_v12  ;;  %178 = vmatpush.msra.mxu1 %v147_v20  ;;  %v142_v30 = vld [vmem:[%s455_s2 + $0xb8] sm:$0xff]  ;;  %v121_v31 = vld [vmem:[%s455_s2 + $0x10] sm:$0xff]  ;;  %v120_v33 = vld [vmem:[%s455_s2 + $0x8] sm:$0xff] }
   0xc   :  { %88 = vmatpush.msra.mxu3 %v23_v10  ;;  %v141_v32 = vld [vmem:[%s455_s2 + $0xb0] sm:$0xff]  ;;  %v140_v34 = vld [vmem:[%s455_s2 + $0xa8] sm:$0xff]  ;;  %v119_v35 = vld [vmem:[%s455_s2] sm:$0xff] }
   0xd   :  { %238 = vmatmul.msk.f32.vlgmr.msrb.gmra.mxu3 %vm29_vm0, %v20_v2  ;;  %160 = vmatpush.msra.mxu0 %v129_v15  ;;  %v139_v36 = vld [vmem:[%s455_s2 + $0xa0] sm:$0xff]  ;;  %v138_v37 = vld [vmem:[%s455_s2 + $0x98] sm:$0xff]  ;;  %v137_v38 = vld [vmem:[%s455_s2 + $0x90] sm:$0xff] }
   0xe   :  { %107 = vmatpush.msrb.mxu3 %v28_v13  ;;  %179 = vmatpush.msra.mxu1 %v146_v22  ;;  %v136_v39 = vld [vmem:[%s455_s2 + $0x88] sm:$0xff]  ;;  %v135_v40 = vld [vmem:[%s455_s2 + $0x80] sm:$0xff]  ;;  %v211_v41 = vld [vmem:[%s457_s4 + $0x78] sm:$0xff] }
   0xf   :  { %161 = vmatpush.msra.mxu0 %v128_v17  ;;  %v210_v42 = vld [vmem:[%s457_s4 + $0x70] sm:$0xff]  ;;  %212 = vmatpush.msra.mxu2 %v211_v41  ;;  %v209_v43 = vld [vmem:[%s457_s4 + $0x68] sm:$0xff]  ;;  %v208_v45 = vld [vmem:[%s457_s4 + $0x60] sm:$0xff] }
  0x10   :  { %108 = vmatpush.msrb.mxu3 %v24_v14  ;;  %180 = vmatpush.msra.mxu1 %v145_v24  ;;  %v207_v46 = vld [vmem:[%s457_s4 + $0x58] sm:$0xff]  ;;  %v206_v47 = vld [vmem:[%s457_s4 + $0x50] sm:$0xff]  ;;  %v205_v48 = vld [vmem:[%s457_s4 + $0x48] sm:$0xff] }
  0x11   :  { %162 = vmatpush.msra.mxu0 %v127_v19  ;;  %213 = vmatpush.msra.mxu2 %v210_v42  ;;  %v204_v50 = vld [vmem:[%s457_s4 + $0x40] sm:$0xff]  ;;  %v203_v51 = vld [vmem:[%s457_s4 + $0x38] sm:$0xff]  ;;  %v202_v60 = vld [vmem:[%s457_s4 + $0x30] sm:$0xff] }
  0x12   :  { %181 = vmatpush.msra.mxu1 %v144_v26  ;;  %v201_v61 = vld [vmem:[%s457_s4 + $0x28] sm:$0xff]  ;;  %v200_v62 = vld [vmem:[%s457_s4 + $0x20] sm:$0xff]  ;;  %v199_v63 = vld [vmem:[%s457_s4 + $0x18] sm:$0xff] }
  0x13   :  { %163 = vmatpush.msra.mxu0 %v126_v21  ;;  %214 = vmatpush.msra.mxu2 %v209_v43  ;;  %v198_v0 = vld [vmem:[%s457_s4 + $0x10] sm:$0xff]  ;;  %v197_v1 = vld [vmem:[%s457_s4 + $0x8] sm:$0xff]  ;;  %v241_v3 = vld [vmem:[%s456_s3] ss:$0 sm:$0xff] }
  0x14   :  { %182 = vmatpush.msra.mxu1 %v143_v28 }
  0x15   :  { %239 = vmatmul.msk.f32.vlgmr.msra.gmra.mxu3 %vm29_vm0, %v20_v2  ;;  %164 = vmatpush.msra.mxu0 %v125_v23 }
  0x16   :  { %183 = vmatpush.msra.mxu1 %v142_v30  ;;  %215 = vmatpush.msra.mxu2 %v208_v45 }
  0x17   :  { %165 = vmatpush.msra.mxu0 %v124_v25 }
  0x18   :  { %184 = vmatpush.msra.mxu1 %v141_v32  ;;  %216 = vmatpush.msra.mxu2 %v207_v46 }
  0x19   :  { %166 = vmatpush.msra.mxu0 %v123_v27 }
  0x1a   :  { %185 = vmatpush.msra.mxu1 %v140_v34  ;;  %217 = vmatpush.msra.mxu2 %v206_v47 }
  0x1b   :  { %167 = vmatpush.msra.mxu0 %v122_v29 }
  0x1c   :  { %186 = vmatpush.msra.mxu1 %v139_v36  ;;  %218 = vmatpush.msra.mxu2 %v205_v48 }
  0x1d   :  { %240 = vmatmul.msk.f32.vlgmr.msrb.gmra.mxu3 %vm29_vm0, %v20_v2  ;;  %168 = vmatpush.msra.mxu0 %v121_v31  ;;  %v196_v2 = vld [vmem:[%s457_s4] sm:$0xff] }
  0x1e   :  { %187 = vmatpush.msra.mxu1 %v138_v37  ;;  %219 = vmatpush.msra.mxu2 %v204_v50 }
  0x1f   :  { %169 = vmatpush.msra.mxu0 %v120_v33 }
  0x20   :  { %188 = vmatpush.msra.mxu1 %v137_v38  ;;  %220 = vmatpush.msra.mxu2 %v203_v51 }
  0x21   :  { %170 = vmatpush.msra.mxu0 %v119_v35 }
  0x22   :  { %189 = vmatpush.msra.mxu1 %v136_v39  ;;  %221 = vmatpush.msra.mxu2 %v202_v60 }
  0x24   :  { %190 = vmatpush.msra.mxu1 %v135_v40  ;;  %222 = vmatpush.msra.mxu2 %v201_v61 }
  0x26   :  { %223 = vmatpush.msra.mxu2 %v200_v62 }
  0x28   :  { %224 = vmatpush.msra.mxu2 %v199_v63 }
  0x2a   :  { %225 = vmatpush.msra.mxu2 %v198_v0 }
  0x2c   :  { %226 = vmatpush.msra.mxu2 %v197_v1 }
  0x2e   :  { %227 = vmatpush.msra.mxu2 %v196_v2 }
  0x88   :  { %v50_v44 = vpop.f32.mrf.mxu3 }
  0x89   :  { %v113_v53 = vmax.f32 %v50_v44, 0.0 }
  0x90   :  { %v70_v49 = vpop.f32.mrf.mxu3 }
  0x91   :  { %v114_v57 = vmax.f32 %v70_v49, 0.0 }
  0x98   :  { %v90_v52 = vpop.f32.mrf.mxu3 }
  0x99   :  { %v115_v54 = vmax.f32 %v90_v52, 0.0 }
  0x9b   :  { %v117_v55 = vmax.f32 %v113_v53, %v115_v54 }
  0x9d   :  { %171 = vmatmul.f32.vlgmr.msra.gmra.mxu0 %v117_v55 }
  0xa0   :  { %v110_v56 = vpop.f32.mrf.mxu3 }
  0xa1   :  { %v116_v58 = vmax.f32 %v110_v56, 0.0 }
  0xa3   :  { %v118_v59 = vmax.f32 %v114_v57, %v116_v58 }
  0xa5   :  { %191 = vmatmul.f32.vlgmr.msra.gmra.mxu1 %v118_v59 }
 0x11a   :  { %v172_v4 = vpop.f32.mrf.mxu0 }
 0x11b   :  { %v173_v5 = vadd.f32 %v241_v3, %v172_v4 }
 0x122   :  { %v192_v6 = vpop.f32.mrf.mxu1 }
 0x123   :  { %v193_v7 = vadd.f32 %v192_v6, %v173_v5 }
 0x125   :  { %v195_v8 = vmax.f32 %v193_v7, 0.0 }
 0x127   :  { %228 = vmatmul.f32.vlgmr.msra.gmra.mxu2 %v195_v8 }
 0x1aa   :  { %v229_v9 = vpop.f32.mrf.mxu2 }
 0x1ab   :  { %232 = vst [vmem:[%s458_s5] sm:$0xff] %v229_v9 }

</bundles_post_ra>
